<compile_context>
chip_gen: v7x
topology: tpu7x:2x2x1
jax: 0.10.0
libtpu: 0.0.40
codegen_flags: <defaults>
</compile_context>

<pallas_src>
import functools
import math

import jax
import jax.numpy as jnp
from jax import lax
from jax.experimental import pallas as pl
from jax.experimental.pallas import tpu as pltpu


# -----------------------------------------------------------------------------
# Kernels
# -----------------------------------------------------------------------------
def _linear_kernel_single_k(x_ref, w_ref, b_ref, o_ref, *, compute_dtype):
    """Whole contraction (tk == D_in) in one pass: no accumulator, bias fused."""
    x = x_ref[...]
    w = w_ref[...]
    if compute_dtype is not None:
        x = x.astype(compute_dtype)
        w = w.astype(compute_dtype)
    acc = lax.dot_general(
        x, w, dimension_numbers=(((1,), (0,)), ((), ())),
        preferred_element_type=jnp.float32,
    )
    o_ref[...] = (acc + b_ref[...]).astype(o_ref.dtype)


def _linear_kernel_multi_k_f32out(x_ref, w_ref, b_ref, o_ref, *, compute_dtype):
    """K-tiled variant for float32 outputs: accumulate directly into o_ref
    (output tile is VMEM-resident across the K axis), no scratch, no epilogue
    copy. Bias is added on the last K step."""
    k = pl.program_id(2)

    @pl.when(k == 0)
    def _():
        o_ref[...] = jnp.zeros_like(o_ref)

    x = x_ref[...]
    w = w_ref[...]
    if compute_dtype is not None:
        x = x.astype(compute_dtype)
        w = w.astype(compute_dtype)
    o_ref[...] += lax.dot_general(
        x, w, dimension_numbers=(((1,), (0,)), ((), ())),
        preferred_element_type=jnp.float32,
    )

    @pl.when(k == pl.num_programs(2) - 1)
    def _():
        o_ref[...] += b_ref[...]


def _linear_kernel_multi_k_scratch(x_ref, w_ref, b_ref, o_ref, acc_ref, *,
                                   compute_dtype):
    """K-tiled variant for low-precision outputs: f32 VMEM accumulator."""
    k = pl.program_id(2)

    @pl.when(k == 0)
    def _():
        acc_ref[...] = jnp.zeros_like(acc_ref)

    x = x_ref[...]
    w = w_ref[...]
    if compute_dtype is not None:
        x = x.astype(compute_dtype)
        w = w.astype(compute_dtype)
    acc_ref[...] += lax.dot_general(
        x, w, dimension_numbers=(((1,), (0,)), ((), ())),
        preferred_element_type=jnp.float32,
    )

    @pl.when(k == pl.num_programs(2) - 1)
    def _():
        o_ref[...] = (acc_ref[...] + b_ref[...]).astype(o_ref.dtype)


# -----------------------------------------------------------------------------
# Tile selection
# -----------------------------------------------------------------------------
# Double-buffered streamed-tile budget: comfortably inside v7x's 64 MiB physical
# VMEM per TensorCore (the smallest of v5e/v6e/v7x), ~an order of magnitude
# larger than the old 256/256/512 f32 tiling.
_VMEM_STREAM_BUDGET = 40 * 1024 * 1024
_VMEM_LIMIT_BYTES = 56 * 1024 * 1024   # scoped limit requested from Mosaic
_TM_MAX = 1024   # cover the whole batch when possible -> W streamed once
_TN_MAX = 512    # multiple of 256 (keeps the v6e/v7x 256x256 MXU tiles full)


def _choose_tiles(B, D_out, D_in, x_bytes, w_bytes, out_bytes, out_is_f32):
    def fits(tm, tn, tk):
        has_k = tk < D_in
        f = 2 * tm * tk * x_bytes          # x tiles (double-buffered)
        f += 2 * tk * tn * w_bytes         # W tiles (double-buffered)
        f += 2 * tn * 4                    # bias tiles
        f += 2 * tm * tn * out_bytes       # output tiles (double-buffered)
        if has_k and not out_is_f32:
            f += tm * tn * 4               # f32 scratch accumulator
        return f <= _VMEM_STREAM_BUDGET

    # Priority: keep tm maximal (W streamed once per forward), then kill the
    # K axis (tk == D_in), then keep tn large.
    tm_cands = [B] if B <= _TM_MAX else [_TM_MAX, 512, 256, 128, 64, 32, 16, 8]
    tn_cands = [D_out] if D_out <= _TN_MAX else [_TN_MAX, 256, 128]
    tk_cands = [D_in]
    t = (D_in // 128) * 128
    while t >= 128:
        if D_in % t == 0 and t != D_in:
            tk_cands.append(t)
        t -= 128

    for tm in tm_cands:
        for tk in tk_cands:
            for tn in tn_cands:
                if fits(tm, tn, tk):
                    return tm, tn, tk
    # Fallback: smallest legal tiles (correct even if slightly past the budget).
    return tm_cands[-1], tn_cands[-1], tk_cands[-1]


# -----------------------------------------------------------------------------
# Forward wrapper
# -----------------------------------------------------------------------------
def random_network_forward(x, w_kn, bias, *, compute_dtype=None):
    """Pallas equivalent of RandomNetwork.forward (nn.Linear(D, D)).

    x:    [B, D_in]
    w_kn: [D_in, D_out]   PyTorch weight [D_out, D_in] pre-transposed ONCE at
                          init (see prepare_random_network_params).
    bias: [D_out]
    compute_dtype: optional dtype (e.g. jnp.bfloat16) to cast the matmul
                   operands to inside the kernel; accumulation stays float32.
    returns [B, D_out] in x.dtype
    """
    B, D_in = x.shape
    K, D_out = w_kn.shape
    assert K == D_in, "weight in-features must match x features"
    assert bias.shape == (D_out,)

    out_dtype = x.dtype
    out_is_f32 = jnp.dtype(out_dtype) == jnp.dtype(jnp.float32)

    tm, tn, tk = _choose_tiles(
        B, D_out, D_in,
        jnp.dtype(x.dtype).itemsize,
        jnp.dtype(w_kn.dtype).itemsize,
        jnp.dtype(out_dtype).itemsize,
        out_is_f32,
    )
    has_k_axis = tk < D_in

    n_m = -(-B // tm)
    n_n = -(-D_out // tn)

    b2 = bias.reshape(1, D_out)   # 2-D, lane-dense bias for TPU broadcast

    cost = pl.CostEstimate(
        flops=2 * B * D_out * D_in,
        transcendentals=0,
        bytes_accessed=(
            B * D_in * jnp.dtype(x.dtype).itemsize
            + n_m * D_in * D_out * jnp.dtype(w_kn.dtype).itemsize  # W re-read per M block
            + n_m * D_out * jnp.dtype(bias.dtype).itemsize
            + B * D_out * jnp.dtype(out_dtype).itemsize
        ),
    )

    if not has_k_axis:
        grid = (n_m, n_n)
        kernel = functools.partial(_linear_kernel_single_k,
                                   compute_dtype=compute_dtype)
        in_specs = [
            pl.BlockSpec((tm, D_in), lambda i, j: (i, 0)),
            pl.BlockSpec((D_in, tn), lambda i, j: (0, j)),
            pl.BlockSpec((1, tn), lambda i, j: (0, j)),
        ]
        out_spec = pl.BlockSpec((tm, tn), lambda i, j: (i, j))
        scratch = []
        dims = ("parallel", "parallel")
    else:
        grid = (n_m, n_n, D_in // tk)   # tk divides D_in exactly (no ragged K)
        if out_is_f32:
            kernel = functools.partial(_linear_kernel_multi_k_f32out,
                                       compute_dtype=compute_dtype)
            scratch = []
        else:
            kernel = functools.partial(_linear_kernel_multi_k_scratch,
                                       compute_dtype=compute_dtype)
            scratch = [pltpu.VMEM((tm, tn), jnp.float32)]
        in_specs = [
            pl.BlockSpec((tm, tk), lambda i, j, k: (i, k)),
            pl.BlockSpec((tk, tn), lambda i, j, k: (k, j)),
            pl.BlockSpec((1, tn), lambda i, j, k: (0, j)),
        ]
        out_spec = pl.BlockSpec((tm, tn), lambda i, j, k: (i, j))
        dims = ("parallel", "parallel", "arbitrary")

    return pl.pallas_call(
        kernel,
        out_shape=jax.ShapeDtypeStruct((B, D_out), out_dtype),
        grid_spec=pltpu.PrefetchScalarGridSpec(
            num_scalar_prefetch=0,
            grid=grid,
            in_specs=in_specs,
            out_specs=out_spec,
            scratch_shapes=scratch,
        ),
        compiler_params=pltpu.CompilerParams(
            dimension_semantics=dims,
            vmem_limit_bytes=_VMEM_LIMIT_BYTES,
        ),
        cost_estimate=cost,
    )(x, w_kn, b2)


# -----------------------------------------------------------------------------
# Parameter init (matches RandomNetwork.reset_parameters) + one-time packing
# -----------------------------------------------------------------------------
def init_random_network_params(key, input_dim, alpha, dtype=jnp.float32):
    """Deterministic re-implementation of RandomNetwork.reset_parameters."""
    eye = jnp.eye(input_dim, dtype=dtype)
    std = math.sqrt(2.0 / (input_dim + input_dim))
    normal_dist = jax.random.normal(key, (input_dim, input_dim), dtype=dtype) * std
    weight = alpha * eye + (1.0 - alpha) * normal_dist   # [out, in] (PyTorch layout)
    bias = jnp.zeros((input_dim,), dtype=dtype)
    return weight, bias


def prepare_random_network_params(weight, bias, *, weight_dtype=None):
    """One-time packing of the frozen params for the kernel: transpose the
    PyTorch [out, in] weight to [in, out] (K on sublanes / N on lanes) and
    optionally downcast it (bf16 halves the dominant W HBM stream)."""
    w_kn = weight.T
    if weight_dtype is not None:
        w_kn = w_kn.astype(weight_dtype)
    return jnp.asarray(w_kn), jnp.asarray(bias)


if __name__ == "__main__":
    key = jax.random.PRNGKey(0)
    k_x, k_w = jax.random.split(key)

    batch = 8
    input_dim = 128
    alpha = 0.7

    x = jax.random.normal(k_x, (batch, input_dim), dtype=jnp.float32)
    weight, bias0 = init_random_network_params(k_w, input_dim, alpha)
    w_kn, bias = prepare_random_network_params(weight, bias0)

    # Reference: exactly what torch nn.Linear forward computes.
    ref = x @ weight.T + bias

    # f32 path (same numerics as the torch module).
    out = jax.block_until_ready(random_network_forward(x, w_kn, bias))
    assert out.shape == (batch, input_dim)
    assert jnp.allclose(out, ref, atol=1e-4, rtol=1e-4)

    # bf16-fed MXU path (f32 accumulation) -- the fast path on v5e/v6e/v7x.
    out_bf16 = jax.block_until_ready(
        random_network_forward(x, w_kn, bias, compute_dtype=jnp.bfloat16))
    assert out_bf16.shape == (batch, input_dim)
    assert jnp.allclose(out_bf16, ref, atol=3e-2, rtol=3e-2)

    print("KERNEL_OK")
</pallas_src>

<mosaic_0001>
module attributes {stable_mosaic.version = 11 : i64} {
  func.func @_linear_kernel_single_k(%arg0: i32, %arg1: i32, %arg2: memref<8x128xf32, #tpu.memory_space<vmem>>, %arg3: memref<128x128xf32, #tpu.memory_space<vmem>>, %arg4: memref<1x128xf32, #tpu.memory_space<vmem>>, %arg5: memref<8x128xf32, #tpu.memory_space<vmem>>) attributes {dimension_semantics = [#tpu.dimension_semantics<parallel>, #tpu.dimension_semantics<parallel>], iteration_bounds = array<i64: 1, 1>, scalar_prefetch = 0 : i64, scratch_operands = 0 : i64, tpu.core_type = #tpu.core_type<tc>, window_params = [{transform_indices = @transform_0, window_bounds = array<i64: 8, 128>}, {transform_indices = @transform_1, window_bounds = array<i64: 128, 128>}, {transform_indices = @transform_2, window_bounds = array<i64: 1, 128>}, {transform_indices = @transform_3, window_bounds = array<i64: 8, 128>}]} {
    %c0 = arith.constant 0 : index
    %c0_0 = arith.constant 0 : index
    %0 = vector.load %arg2[%c0, %c0_0] : memref<8x128xf32, #tpu.memory_space<vmem>>, vector<8x128xf32>
    %c0_1 = arith.constant 0 : index
    %c0_2 = arith.constant 0 : index
    %1 = vector.load %arg3[%c0_1, %c0_2] : memref<128x128xf32, #tpu.memory_space<vmem>>, vector<128x128xf32>
    %cst = arith.constant dense<0.000000e+00> : vector<8x128xf32>
    %2 = tpu.matmul %0, %1, %cst {dimension_numbers = #tpu.dot_dimension_numbers<[1], [0], [0], [1], [0, 0, 1, 1], [], []>} : vector<8x128xf32>, vector<128x128xf32>, vector<8x128xf32> -> vector<8x128xf32>
    %c0_3 = arith.constant 0 : index
    %c0_4 = arith.constant 0 : index
    %3 = vector.load %arg4[%c0_3, %c0_4] : memref<1x128xf32, #tpu.memory_space<vmem>>, vector<1x128xf32>
    %4 = vector.broadcast %3 : vector<1x128xf32> to vector<8x128xf32>
    %5 = arith.addf %2, %4 : vector<8x128xf32>
    %c0_5 = arith.constant 0 : index
    %c0_6 = arith.constant 0 : index
    %6 = vector.load %arg5[%c0_5, %c0_6] : memref<8x128xf32, #tpu.memory_space<vmem>>, vector<8x128xf32>
    tpu.vector_store %arg5[%c0_5, %c0_6], %5 {strides = array<i32>} : memref<8x128xf32, #tpu.memory_space<vmem>>, vector<8x128xf32>,
    return
  }
  func.func @transform_0(%arg0: i32, %arg1: i32) -> (i32, i32) {
    %c0_i32 = arith.constant 0 : i32
    %c0_i32_0 = arith.constant 0 : i32
    return %arg0, %c0_i32 : i32, i32
  }
  func.func @transform_1(%arg0: i32, %arg1: i32) -> (i32, i32) {
    %c0_i32 = arith.constant 0 : i32
    %c0_i32_0 = arith.constant 0 : i32
    return %c0_i32, %arg1 : i32, i32
  }
  func.func @transform_2(%arg0: i32, %arg1: i32) -> (i32, i32) {
    %c0_i32 = arith.constant 0 : i32
    %c0_i32_0 = arith.constant 0 : i32
    return %c0_i32, %arg1 : i32, i32
  }
  func.func @transform_3(%arg0: i32, %arg1: i32) -> (i32, i32) {
    %c0_i32 = arith.constant 0 : i32
    return %arg0, %arg1 : i32, i32
  }
}

</mosaic_0001>

<bundles_post_ra>
// kernel: tpu_custom_call.1
= control target key start
LH: loop header
LB: loop body
LE: loop exit
PB: predicated region body
PF: predicated region fallthrough
CT: control target
= control target key end

     0   :  { %8 = vsyncpa [#allocation3], 0  ;;  %s383_s0 = inlined_call_operand.hbm [shape: f32[8,128], index: 0, kind: input, shape index: {}]   ;;  %s384_s1 = inlined_call_operand.hbm [shape: f32[128,128], index: 1, kind: input, shape index: {}]   ;;  %s385_s2 = inlined_call_operand.vmem [shape: f32[1,128], index: 2, kind: input, shape index: {}]   ;;  %s386_s3 = inlined_call_operand.hbm [shape: f32[8,128], index: 3, kind: output, shape index: {}]  }
   0x1   :  { %9 = vsyncpa [#allocation6], 0 }
   0x2   :  { %10 = vsyncpa [#allocation4], 0  ;;  %s309_s12 = smov [#allocation2]   ;;  %s310_s14 = smov [#allocation5]  }
   0x3   :  { %s17_s13 = sshll.u32 %s309_s12, 4  ;;  %s26_s15 = sshll.u32 %s310_s14, 4  ;;  %s18_s13 = int_to_ptr.vmem [resolvable:$true] %s17_s13  ;;  %s337_s15 = int_to_ptr.vmem [resolvable:$true] %s26_s15 }
   0x4   :  { %s237_s18 = scalar_lea.hbm %s383_s0, 128 }
   0x5   :  { %p238_p0 = scmp.ne.s32.totalorder %s383_s0, %s237_s18  ;;  %p241_p1 = scmp.lt.u32.totalorder %s237_s18, %s383_s0 }
   0x7   :  { %p243_p2 = pnand %p241_p1, %p238_p0 }
   0x9   :  { %246 = shalt.err (!%p243_p2)
}
   0xa   :  { %s247_s23 = scalar_lea.vmem %s18_s13, 128  ;;  %p252_p4 = scmp.lt.s32.totalorder %s18_s13, %s18_s13 }
   0xb   :  { %p248_p3 = scmp.ne.s32.totalorder %s18_s13, %s247_s23  ;;  %p253_p5 = scmp.lt.s32.totalorder %s247_s23, %s247_s23 }
   0xd   :  { %p254_p6 = por %p253_p5, %p252_p4 }
   0xf   :  { %p255_p7 = pnand %p254_p6, %p248_p3 }
  0x11   :  { %258 = shalt.err (!%p255_p7)
}
  0x12   :  { %20 = dma.hbm_to_vmem [thread:$0]  %s383_s0, 128, %s18_s13, [#allocation3]  }
  0x13   :  { %s259_s28 = scalar_lea.hbm %s384_s1, 2048 }
  0x14   :  { %p260_p8 = scmp.ne.s32.totalorder %s384_s1, %s259_s28  ;;  %p263_p9 = scmp.lt.u32.totalorder %s259_s28, %s384_s1 }
  0x16   :  { %p265_p10 = pnand %p263_p9, %p260_p8 }
  0x18   :  { %268 = shalt.err (!%p265_p10)
}
  0x19   :  { %s269_s6 = scalar_lea.vmem %s337_s15, 2048  ;;  %p274_p12 = scmp.lt.s32.totalorder %s337_s15, %s337_s15 }
  0x1a   :  { %p270_p11 = scmp.ne.s32.totalorder %s337_s15, %s269_s6  ;;  %p275_p13 = scmp.lt.s32.totalorder %s269_s6, %s269_s6 }
  0x1c   :  { %p276_p0 = por %p275_p13, %p274_p12 }
  0x1e   :  { %p277_p1 = pnand %p276_p0, %p270_p11 }
  0x20   :  { %280 = shalt.err (!%p277_p1)
}
  0x21   :  { %s311_s0 = smov 128   ;;  %s312_s7 = smov 8  }
  0x22   :  { %32 = dma.hbm_to_vmem [thread:$0]  %s384_s1, 2048, %s337_s15, [#allocation6], %s311_s0, %s311_s0, %s312_s7  }
  0x23   :  { %303 = dma.done.wait [#allocation3], 128  }
  0x24   :  { %304 = vsyncadd [#allocation3], 4294967168 }
  0x25   :  { %305 = dma.done.wait [#allocation6], 2048  }
  0x26   :  { %306 = vsyncadd [#allocation6], 4294965248  ;;  %v313_v0 = vmov 0.0|0.0   ;;  %vm314_vm0 = vmmov 0   ;;  %v315_v1 = vmov 0.0   ;;  %v42_v2 = vld [vmem:[#allocation5] sm:$0xff] }
  0x27   :  { %205 = vmatprep.subr.bf16.mxu0 %v313_v0  ;;  %202 = vmatprep.mubr.msk.f32.mxu0 %vm314_vm0, %v315_v1  ;;  %v43_v3 = vld [vmem:[#allocation5 + $0x8] sm:$0xff]  ;;  %v44_v4 = vld [vmem:[#allocation5 + $0x10] sm:$0xff]  ;;  %v45_v6 = vld [vmem:[#allocation5 + $0x18] sm:$0xff]  ;;  %s316_s11 = smov [#allocation7]  }
  0x28   :  { %v206_v5 = vpack.c.bf16 %v43_v3, %v42_v2  ;;  %v209_v7 = vpack.c.bf16 %v45_v6, %v44_v4  ;;  %v46_v8 = vld [vmem:[#allocation5 + $0x20] sm:$0xff]  ;;  %v47_v9 = vld [vmem:[#allocation5 + $0x28] sm:$0xff]  ;;  %v48_v11 = vld [vmem:[#allocation5 + $0x30] sm:$0xff]  ;;  %s142_s12 = sshll.u32 %s316_s11, 4  ;;  %s143_s12 = int_to_ptr.vmem [resolvable:$true] %s142_s12 }
  0x29   :  { %v212_v10 = vpack.c.bf16 %v47_v9, %v46_v8  ;;  %v49_v12 = vld [vmem:[#allocation5 + $0x38] sm:$0xff]  ;;  %v50_v14 = vld [vmem:[#allocation5 + $0x40] sm:$0xff]  ;;  %v51_v15 = vld [vmem:[#allocation5 + $0x48] sm:$0xff]  ;;  %s281_s13 = scalar_lea.vmem %s143_s12, 128  ;;  %p286_p3 = scmp.lt.s32.totalorder %s143_s12, %s143_s12 }
  0x2a   :  { %207 = vmatpush3.bf16.msra.mxu0 %v206_v5  ;;  %v215_v13 = vpack.c.bf16 %v49_v12, %v48_v11  ;;  %v218_v16 = vpack.c.bf16 %v51_v15, %v50_v14  ;;  %v52_v17 = vld [vmem:[#allocation5 + $0x50] sm:$0xff]  ;;  %v53_v18 = vld [vmem:[#allocation5 + $0x58] sm:$0xff]  ;;  %v54_v20 = vld [vmem:[#allocation5 + $0x60] sm:$0xff]  ;;  %p282_p2 = scmp.ne.s32.totalorder %s143_s12, %s281_s13  ;;  %p287_p4 = scmp.lt.s32.totalorder %s281_s13, %s281_s13 }
  0x2b   :  { %208 = vmatprep.subr.bf16.mxu0 %v313_v0  ;;  %v221_v19 = vpack.c.bf16 %v53_v18, %v52_v17  ;;  %v55_v21 = vld [vmem:[#allocation5 + $0x68] sm:$0xff]  ;;  %v56_v23 = vld [vmem:[#allocation5 + $0x70] sm:$0xff]  ;;  %v57_v24 = vld [vmem:[#allocation5 + $0x78] sm:$0xff] }
  0x2c   :  { %v224_v22 = vpack.c.bf16 %v55_v21, %v54_v20  ;;  %v227_v25 = vpack.c.bf16 %v57_v24, %v56_v23  ;;  %v41_v26 = vld [vmem:[#allocation2] sm:$0xff]  ;;  %p288_p5 = por %p287_p4, %p286_p3 }
  0x2d   :  { %v152_v27 = vld [vmem:[%s385_s2] ss:$0 sm:$0xff] }
  0x2e   :  { %210 = vmatpush3.bf16.msra.mxu0 %v209_v7  ;;  %p289_p6 = pnand %p288_p5, %p282_p2 }
  0x2f   :  { %211 = vmatprep.subr.bf16.mxu0 %v313_v0 }
  0x32   :  { %213 = vmatpush3.bf16.msra.mxu0 %v212_v10 }
  0x33   :  { %214 = vmatprep.subr.bf16.mxu0 %v313_v0 }
  0x36   :  { %216 = vmatpush3.bf16.msra.mxu0 %v215_v13 }
  0x37   :  { %217 = vmatprep.subr.bf16.mxu0 %v313_v0 }
  0x3a   :  { %219 = vmatpush3.bf16.msra.mxu0 %v218_v16 }
  0x3b   :  { %220 = vmatprep.subr.bf16.mxu0 %v313_v0 }
  0x3e   :  { %222 = vmatpush3.bf16.msra.mxu0 %v221_v19 }
  0x3f   :  { %223 = vmatprep.subr.bf16.mxu0 %v313_v0 }
  0x42   :  { %225 = vmatpush3.bf16.msra.mxu0 %v224_v22 }
  0x43   :  { %226 = vmatprep.subr.bf16.mxu0 %v313_v0 }
  0x46   :  { %228 = vmatpush3.bf16.msra.mxu0 %v227_v25 }
  0x49   :  { %203 = vmatmul.mubr.f32.vlgmr.msra.gmra.mrb[0].mxu0 %v41_v26 }
 0x11c   :  { %v131_v28 = vpop.f32.mrb[0].mxu0 }
 0x11d   :  { %v132_v29 = vadd.f32 %v152_v27, %v131_v28  ;;  %v204_v30 = vpop.f32.mrb[1].mxu0 }
 0x11f   :  { %135 = vst [vmem:[#allocation7] sm:$0xff] %v132_v29 }
 0x120   :  { %292 = shalt.err (!%p289_p6)
}
 0x121   :  { %s293_s16 = scalar_lea.hbm %s386_s3, 128 }
 0x122   :  { %p294_p7 = scmp.ne.s32.totalorder %s386_s3, %s293_s16  ;;  %p297_p8 = scmp.lt.u32.totalorder %s293_s16, %s386_s3 }
 0x124   :  { %p299_p9 = pnand %p297_p8, %p294_p7 }
 0x126   :  { %302 = shalt.err (!%p299_p9)
}
 0x127   :  { %145 = dma.vmem_to_hbm [thread:$0]  %s143_s12, 128, %s386_s3, [#allocation4]  }
 0x128   :  { %307 = dma.done.wait [#allocation4], 128  }
 0x129   :  { %308 = vsyncadd [#allocation4], 4294967168 }
 0x12a   :  { %149 = vsyncpa [#allocation3], 1 }
 0x12b   :  { %150 = vsyncpa [#allocation6], 1 }
 0x12c   :  { %151 = vsyncpa [#allocation4], 1 }

</bundles_post_ra>
